<compile_context>
chip_gen: v5e
topology: v5e:2x2
jax: 0.10.0
libtpu: 0.0.40
codegen_flags: <defaults>
</compile_context>

<pallas_src>
import jax
import jax.numpy as jnp
from jax.experimental import pallas as pl
from jax.experimental.pallas import tpu as pltpu


def _sse_kernel(w_ref, x_ref, o_ref):
    # w_ref: (C,) f32 in SMEM (scalar-prefetched Conv1x1 weight, no bias)
    # x_ref / o_ref: (bb, C, thw) blocks, thw a multiple of 128 (lane-dense)
    x = x_ref[...]
    C = x.shape[1]
    # Per-pixel channel sum as unrolled scalar FMAs (f32 accumulation).
    q = x[:, 0:1, :].astype(jnp.float32) * w_ref[0]
    for c in range(1, C):
        q = q + x[:, c:c + 1, :].astype(jnp.float32) * w_ref[c]
    gate = jax.nn.sigmoid(q)                                  # (bb, 1, thw), EUP
    # Multiply in the input dtype (bf16 stays bf16); sublane-broadcast of gate.
    o_ref[...] = (x * gate.astype(x.dtype)).astype(o_ref.dtype)


def _pick_tiles(B, C, HW, itemsize):
    """Generation-safe tiling: per-block <= ~2 MiB, thw multiple of 128."""
    c_pad = -(-C // 8) * 8                      # sublane padding of the C dim
    target = 2 * 1024 * 1024                    # per-block VMEM budget (bytes)
    # spatial tile: multiple of 128, capped at 8192 lanes and at the budget
    thw = (target // (c_pad * itemsize)) // 128 * 128
    thw = max(128, min(8192, thw))
    hw_pad = -(-HW // 128) * 128
    thw = min(thw, hw_pad)
    hw_pad = -(-hw_pad // thw) * thw            # make thw divide padded HW
    # grow batch block over divisors of B while the block stays under budget
    per_sample = c_pad * thw * itemsize
    bb = 1
    for d in range(1, B + 1):
        if B % d == 0 and d * per_sample <= target:
            bb = d
    return bb, thw, hw_pad


def sse(x, w):
    """sSE forward.  x: (B, C, H, W);  w: (1, C, 1, 1) Conv2d(C,1,1,bias=False) weight."""
    B, C, H, W = x.shape
    HW = H * W
    bb, thw, hw_pad = _pick_tiles(B, C, HW, x.dtype.itemsize)

    x2 = x.reshape(B, C, HW)                    # contiguous, no-copy reshape
    if hw_pad != HW:
        x2 = jnp.pad(x2, ((0, 0), (0, 0), (0, hw_pad - HW)))
    w1 = w.reshape(C).astype(jnp.float32)       # SMEM wants 32-bit scalars

    out = pl.pallas_call(
        _sse_kernel,
        out_shape=jax.ShapeDtypeStruct((B, C, hw_pad), x.dtype),
        grid_spec=pltpu.PrefetchScalarGridSpec(
            num_scalar_prefetch=1,              # w1 -> SMEM, passed to index_maps
            grid=(B // bb, hw_pad // thw),
            in_specs=[
                pl.BlockSpec((bb, C, thw), lambda b, s, w: (b, 0, s)),
            ],
            out_specs=pl.BlockSpec((bb, C, thw), lambda b, s, w: (b, 0, s)),
        ),
        compiler_params=pltpu.CompilerParams(
            dimension_semantics=("parallel", "parallel")),  # v7x: both TCs busy
    )(w1, x2)

    if hw_pad != HW:
        out = out[..., :HW]
    return out.reshape(B, C, H, W)


def _sse_ref(x, w):
    q = jnp.einsum("bchw,c->bhw", x, w.reshape(-1))[:, None]
    return x * jax.nn.sigmoid(q)


if __name__ == "__main__":
    B, C, H, W = 2, 4, 16, 16
    key = jax.random.PRNGKey(0)
    kx, kw = jax.random.split(key)
    x = jax.random.normal(kx, (B, C, H, W), jnp.float32)
    w = 0.3 * jax.random.normal(kw, (1, C, 1, 1), jnp.float32)  # Conv2d(C,1,1,bias=False)

    out = sse(x, w)
    jax.block_until_ready(out)

    ref = _sse_ref(x, w)
    assert out.shape == (B, C, H, W)
    assert jnp.allclose(out, ref, atol=1e-4, rtol=1e-4), "mismatch vs reference"
    print("KERNEL_OK")
</pallas_src>

<mosaic_0001>
module attributes {stable_mosaic.version = 11 : i64} {
  func.func @_sse_kernel(%arg0: i32, %arg1: i32, %arg2: memref<4xf32, #tpu.memory_space<smem>>, %arg3: memref<2x4x256xf32, #tpu.memory_space<vmem>>, %arg4: memref<2x4x256xf32, #tpu.memory_space<vmem>>) attributes {dimension_semantics = [#tpu.dimension_semantics<parallel>, #tpu.dimension_semantics<parallel>], iteration_bounds = array<i64: 1, 1>, scalar_prefetch = 1 : i64, scratch_operands = 0 : i64, tpu.core_type = #tpu.core_type<tc>, window_params = [{transform_indices = @transform_0, window_bounds = array<i64: 2, 4, 256>}, {transform_indices = @transform_1, window_bounds = array<i64: 2, 4, 256>}]} {
    %c0 = arith.constant 0 : index
    %c0_0 = arith.constant 0 : index
    %c0_1 = arith.constant 0 : index
    %0 = vector.load %arg3[%c0, %c0_0, %c0_1] : memref<2x4x256xf32, #tpu.memory_space<vmem>>, vector<2x4x256xf32>
    %1 = vector.extract_strided_slice %0 {offsets = [0, 0, 0], sizes = [2, 1, 256], strides = [1, 1, 1]} : vector<2x4x256xf32> to vector<2x1x256xf32>
    %c0_2 = arith.constant 0 : index
    %2 = memref.load %arg2[%c0_2] : memref<4xf32, #tpu.memory_space<smem>>
    %3 = vector.broadcast %2 : f32 to vector<2x1x256xf32>
    %4 = arith.mulf %1, %3 : vector<2x1x256xf32>
    %5 = vector.extract_strided_slice %0 {offsets = [0, 1, 0], sizes = [2, 1, 256], strides = [1, 1, 1]} : vector<2x4x256xf32> to vector<2x1x256xf32>
    %c1 = arith.constant 1 : index
    %6 = memref.load %arg2[%c1] : memref<4xf32, #tpu.memory_space<smem>>
    %7 = vector.broadcast %6 : f32 to vector<2x1x256xf32>
    %8 = arith.mulf %5, %7 : vector<2x1x256xf32>
    %9 = arith.addf %4, %8 : vector<2x1x256xf32>
    %10 = vector.extract_strided_slice %0 {offsets = [0, 2, 0], sizes = [2, 1, 256], strides = [1, 1, 1]} : vector<2x4x256xf32> to vector<2x1x256xf32>
    %c2 = arith.constant 2 : index
    %11 = memref.load %arg2[%c2] : memref<4xf32, #tpu.memory_space<smem>>
    %12 = vector.broadcast %11 : f32 to vector<2x1x256xf32>
    %13 = arith.mulf %10, %12 : vector<2x1x256xf32>
    %14 = arith.addf %9, %13 : vector<2x1x256xf32>
    %15 = vector.extract_strided_slice %0 {offsets = [0, 3, 0], sizes = [2, 1, 256], strides = [1, 1, 1]} : vector<2x4x256xf32> to vector<2x1x256xf32>
    %c3 = arith.constant 3 : index
    %16 = memref.load %arg2[%c3] : memref<4xf32, #tpu.memory_space<smem>>
    %17 = vector.broadcast %16 : f32 to vector<2x1x256xf32>
    %18 = arith.mulf %15, %17 : vector<2x1x256xf32>
    %19 = arith.addf %14, %18 : vector<2x1x256xf32>
    %20 = arith.negf %19 : vector<2x1x256xf32>
    %21 = math.exp %20 : vector<2x1x256xf32>
    %cst = arith.constant 1.000000e+00 : f32
    %22 = vector.broadcast %cst : f32 to vector<2x1x256xf32>
    %23 = arith.addf %22, %21 : vector<2x1x256xf32>
    %24 = arith.divf %22, %23 : vector<2x1x256xf32>
    %25 = vector.broadcast %24 : vector<2x1x256xf32> to vector<2x4x256xf32>
    %26 = arith.mulf %0, %25 : vector<2x4x256xf32>
    %c0_3 = arith.constant 0 : index
    %c0_4 = arith.constant 0 : index
    %c0_5 = arith.constant 0 : index
    %27 = vector.load %arg4[%c0_3, %c0_4, %c0_5] : memref<2x4x256xf32, #tpu.memory_space<vmem>>, vector<2x4x256xf32>
    tpu.vector_store %arg4[%c0_3, %c0_4, %c0_5], %26 {strides = array<i32>} : memref<2x4x256xf32, #tpu.memory_space<vmem>>, vector<2x4x256xf32>,
    return
  }
  func.func @transform_0(%arg0: i32, %arg1: i32, %arg2: memref<4xf32, #tpu.memory_space<smem>>) -> (i32, i32, i32) {
    %c0_i32 = arith.constant 0 : i32
    %c0_i32_0 = arith.constant 0 : i32
    return %arg0, %c0_i32, %arg1 : i32, i32, i32
  }
  func.func @transform_1(%arg0: i32, %arg1: i32, %arg2: memref<4xf32, #tpu.memory_space<smem>>) -> (i32, i32, i32) {
    %c0_i32 = arith.constant 0 : i32
    %c0_i32_0 = arith.constant 0 : i32
    return %arg0, %c0_i32, %arg1 : i32, i32, i32
  }
}

</mosaic_0001>

<bundles_post_ra>
// kernel: tpu_custom_call.1
= control target key start
LH: loop header
LB: loop body
LE: loop exit
PB: predicated region body
PF: predicated region fallthrough
CT: control target
= control target key end

     0   :  { %s258_s12 = smov [#allocation3]   ;;  %s307_s0 = inlined_call_operand.hbm [shape: f32[4], index: 0, kind: input, shape index: {}]   ;;  %s308_s1 = inlined_call_operand.hbm [shape: f32[2,4,256], index: 1, kind: input, shape index: {}]   ;;  %s309_s2 = inlined_call_operand.hbm [shape: f32[2,4,256], index: 2, kind: output, shape index: {}]  }
   0x1   :  { %s8_s11 = sshll.u32 %s307_s0, 4  ;;  %s9_s11 = int_to_ptr.hbm [resolvable:$true] %s8_s11 }
   0x2   :  { %11 = dma.hbm_to_smem %s9_s11, 16, %s258_s12, [#allocation2] }
   0x3   :  { %252 = dma.done.wait [#allocation2], 16 }
   0x4   :  { %253 = vsyncadd [#allocation2], 4294967280 }
   0x5   :  { %14 = sfence }
   0x6   :  { %15 = vsyncpa [#allocation5], 0 }
   0x7   :  { %16 = vsyncpa [#allocation6], 0  ;;  %s21_s15 = sshll.u32 %s308_s1, 4  ;;  %s259_s16 = smov [#allocation4]   ;;  %s22_s15 = int_to_ptr.hbm [resolvable:$true] %s21_s15 }
   0x8   :  { %s23_s17 = sshll.u32 %s259_s16, 4  ;;  %s260_s18 = smov 128   ;;  %s24_s17 = int_to_ptr.vmem [resolvable:$true] %s23_s17 }
   0x9   :  { %s261_s19 = smov 8  }
   0xa   :  { %29 = dma.hbm_to_vmem [thread:$0]  %s22_s15, 256, %s24_s17, [#allocation5], %s260_s18, %s260_s18, %s261_s19  }
   0xb   :  { %254 = dma.done.wait [#allocation5], 256  }
   0xc   :  { %255 = vsyncadd [#allocation5], 4294967040  ;;  %s36_s0 = sld [smem:[#allocation3]]  ;;  %v287_v0 = vld [vmem:[#allocation4] sm:$0xff]  ;;  %v289_v2 = vld [vmem:[#allocation4 + $0x8] sm:$0xff]  ;;  %vm140_vm8 = vcmask 1043456  }
   0xd   :  { %s168_s20 = sld [smem:[#allocation3 + $0x1]]  ;;  %s262_s1 = smov [#allocation7]  }
   0xe   :  { %s171_s21 = sld [smem:[#allocation3 + $0x2]]  ;;  %s153_s23 = sshll.u32 %s262_s1, 4  ;;  %s154_s23 = int_to_ptr.vmem [resolvable:$true] %s153_s23 }
   0xf   :  { %s174_s22 = sld [smem:[#allocation3 + $0x3]]  ;;  %s155_s26 = sshll.u32 %s309_s2, 4  ;;  %s156_s26 = int_to_ptr.hbm [resolvable:$true] %s155_s26 }
  0x12   :  { %v37_v1 = vstv %s36_s0 }
  0x13   :  { %v38_v3 = vmul.f32 %v37_v1, %v287_v0  ;;  %v41_v4 = vstv %s168_s20  ;;  %v39_v7 = vmul.f32 %v37_v1, %v289_v2 }
  0x14   :  { %v42_v5 = vmul.f32 %v41_v4, %v287_v0  ;;  %v55_v6 = vstv %s171_s21  ;;  %v43_v8 = vmul.f32 %v41_v4, %v289_v2 }
  0x15   :  { %v56_v9 = vmul.f32 %v55_v6, %v287_v0  ;;  %v69_v10 = vstv %s174_s22  ;;  %v57_v11 = vmul.f32 %v55_v6, %v289_v2 }
  0x16   :  { %v169_v12 = vrot.slane %v42_v5, 9  ;;  %v70_v13 = vmul.f32 %v69_v10, %v287_v0  ;;  %v170_v14 = vrot.slane %v43_v8, 9  ;;  %v71_v15 = vmul.f32 %v69_v10, %v289_v2 }
  0x17   :  { %v172_v16 = vrot.slane %v56_v9, 10  ;;  %v173_v17 = vrot.slane %v57_v11, 10 }
  0x18   :  { %v52_v18 = vadd.f32 %v169_v12, %v38_v3  ;;  %v175_v19 = vrot.slane %v70_v13, 11  ;;  %v53_v20 = vadd.f32 %v170_v14, %v39_v7  ;;  %v176_v21 = vrot.slane %v71_v15, 11 }
  0x1a   :  { %v66_v22 = vadd.f32 %v172_v16, %v52_v18  ;;  %v67_v23 = vadd.f32 %v173_v17, %v53_v20 }
  0x1c   :  { %v80_v24 = vadd.f32 %v175_v19, %v66_v22  ;;  %v81_v25 = vadd.f32 %v176_v21, %v67_v23 }
  0x1e   :  { %v177_v26 = vmul.f32 -1.442695, %v80_v24  ;;  %v178_v27 = vmul.f32 -1.442695, %v81_v25 }
  0x20   :  { %184 = vpow2.f32 %v177_v26 }
  0x21   :  { %186 = vpow2.f32 %v178_v27 }
  0x26   :  { %v185_v28 = vpop.eup %184 }
  0x27   :  { %v187_v29 = vpop.eup %186  ;;  %v88_v30 = vadd.f32 1.0, %v185_v28 }
  0x28   :  { %v89_v31 = vadd.f32 1.0, %v187_v29 }
  0x29   :  { %188 = vrcp.f32 %v88_v30  ;;  %vm95_vm0 = vweird.f32 %v88_v30  ;;  %v101_v35 = vand.u32 2147483648, %v88_v30  ;;  %v99_v38 = vand.u32 2147483647, %v88_v30 }
  0x2a   :  { %190 = vrcp.f32 %v89_v31  ;;  %v116_v39 = vand.u32 2147483648, %v89_v31  ;;  %vm110_vm2 = vweird.f32 %v89_v31  ;;  %v114_v41 = vand.u32 2147483647, %v89_v31 }
  0x2b   :  { %v102_v43 = vor.u32 1.1754944e-38, %v101_v35  ;;  %vm100_vm5 = vcmp.eq.f32.partialorder %v99_v38, 8.507059e+37 }
  0x2c   :  { %v117_v46 = vor.u32 1.1754944e-38, %v116_v39  ;;  %vm115_vm7 = vcmp.eq.f32.partialorder %v114_v41, 8.507059e+37 }
  0x2f   :  { %v189_v32 = vpop.eup %188 }
  0x30   :  { %v191_v33 = vpop.eup %190  ;;  %v91_v34 = vmul.f32 %v189_v32, %v88_v30  ;;  %vm96_vm1 = vweird.f32 %v189_v32 }
  0x31   :  { %v106_v36 = vmul.f32 %v191_v33, %v89_v31  ;;  %vm111_vm3 = vweird.f32 %v191_v33  ;;  %vm97_vm4 = vmor %vm95_vm0, %vm96_vm1 }
  0x32   :  { %v92_v37 = vsub.f32 1.0, %v91_v34  ;;  %vm112_vm6 = vmor %vm110_vm2, %vm111_vm3 }
  0x33   :  { %v107_v40 = vsub.f32 1.0, %v106_v36 }
  0x34   :  { %v93_v42 = vmul.f32 %v189_v32, %v92_v37 }
  0x35   :  { %v108_v44 = vmul.f32 %v191_v33, %v107_v40 }
  0x36   :  { %v94_v45 = vadd.f32 %v189_v32, %v93_v42 }
  0x37   :  { %v109_v47 = vadd.f32 %v191_v33, %v108_v44 }
  0x38   :  { %v98_v48 = vsel %vm97_vm4, %v189_v32, %v94_v45 }
  0x39   :  { %v103_v49 = vsel %vm100_vm5, %v102_v43, %v98_v48  ;;  %v113_v50 = vsel %vm112_vm6, %v191_v33, %v109_v47 }
  0x3a   :  { %v122_v51 = vperm.slane %v103_v49, 0  ;;  %v123_v52 = vperm.slane %v103_v49, 4  ;;  %v118_v53 = vsel %vm115_vm7, %v117_v46, %v113_v50 }
  0x3b   :  { %v124_v54 = vperm.slane %v118_v53, 0  ;;  %v125_v55 = vperm.slane %v118_v53, 4 }
  0x3c   :  { %v130_v56 = vperm.slane %v122_v51, 0  ;;  %v131_v57 = vperm.slane %v123_v52, 0 }
  0x3d   :  { %v132_v58 = vperm.slane %v124_v54, 0  ;;  %v133_v59 = vperm.slane %v125_v55, 0 }
  0x3e   :  { %v138_v60 = vrot.slane %v131_v57, 4 }
  0x3f   :  { %v139_v61 = vrot.slane %v133_v59, 4 }
  0x40   :  { %v141_v62 = vsel %vm140_vm8, %v130_v56, %v138_v60 }
  0x41   :  { %v145_v63 = vmul.f32 %v141_v62, %v287_v0  ;;  %v142_v1 = vsel %vm140_vm8, %v132_v58, %v139_v61 }
  0x42   :  { %v146_v3 = vmul.f32 %v142_v1, %v289_v2 }
  0x43   :  { %147 = vst [vmem:[#allocation7] sm:$0xff] %v145_v63 }
  0x44   :  { %148 = vst [vmem:[#allocation7 + $0x8] sm:$0xff] %v146_v3 }
  0x45   :  { %161 = dma.vmem_to_hbm [thread:$0]  %s154_s23, 256, %s156_s26, [#allocation6], %s260_s18, %s260_s18, %s261_s19  }
  0x46   :  { %256 = dma.done.wait [#allocation6], 256  }
  0x47   :  { %257 = vsyncadd [#allocation6], 4294967040 }
  0x48   :  { %166 = vsyncpa [#allocation5], 1 }
  0x49   :  { %167 = vsyncpa [#allocation6], 1 }

</bundles_post_ra>
